<compile_context>
chip_gen: v7x
topology: tpu7x:2x2x1
jax: 0.10.0
libtpu: 0.0.40
codegen_flags: <defaults>
</compile_context>

<pallas_src>
import jax
import jax.numpy as jnp
from jax.experimental import pallas as pl
from jax.experimental.pallas import tpu as pltpu

INPUT_SIZE = 6
EMBEDDING_SIZE = 128

_DEFAULT_TILE_N = 4096          # rows per grid step; multiple of 8
_DEFAULT_MIN_PALLAS_ROWS = 512  # below this, plain XLA is strictly faster


def _linear_kernel(x_ref, w_ref, b_ref, o_ref):
    # x_ref: (tn, K)  w_ref: (K, E)  b_ref: (1, E)  o_ref: (tn, E)
    acc = jnp.dot(x_ref[...], w_ref[...], preferred_element_type=jnp.float32)
    o_ref[...] = (acc + b_ref[...]).astype(o_ref.dtype)


def timestep_embedding(x, weight, bias, *,
                       tile_n=_DEFAULT_TILE_N,
                       out_dtype=None,
                       min_pallas_rows=_DEFAULT_MIN_PALLAS_ROWS,
                       core_parallel=False):
    """x: [..., input_size] -> [..., embedding_size]  (y = x @ W + b)."""
    orig_shape = x.shape
    k = orig_shape[-1]
    e = weight.shape[1]
    assert weight.shape[0] == k, (weight.shape, k)
    if out_dtype is None:
        out_dtype = x.dtype
    out_dtype = jnp.dtype(out_dtype)

    n = 1
    for d in orig_shape[:-1]:
        n *= d
    x2d = x.reshape(n, k)
    b2d = bias.reshape(1, e)

    # --- small-N fast path: pallas_call launch + pipeline prologue dominates here ---
    if n < min_pallas_rows:
        y = jnp.dot(x2d, weight, preferred_element_type=jnp.float32) + b2d
        return y.astype(out_dtype).reshape(orig_shape[:-1] + (e,))

    # Row tile: multiple of 8 sublanes, capped at tile_n. Partial last tile is fine:
    # rows are independent and Pallas masks the out-of-bounds rows on store.
    tn = min(tile_n, max(8, ((n + 7) // 8) * 8))
    grid = (pl.cdiv(n, tn),)

    # Per-step double-buffered VMEM: x tile lane-pads K=6 -> 128 lanes, so it costs the
    # same as a (tn, 128) tile of its dtype.  Add resident W/b + headroom; raise the
    # scoped-VMEM limit only if we exceed the most conservative default (16 MiB, v5e).
    x_item = jnp.dtype(x.dtype).itemsize
    step_bytes = 2 * tn * 128 * (x_item + out_dtype.itemsize)  # 2 bufs each of x + out
    vmem_needed = step_bytes + (2 << 20)
    vmem_limit = vmem_needed if vmem_needed > (16 << 20) else None

    # True traffic for XLA's scheduler (output write dominates).
    bytes_accessed = (n * k * x_item
                      + weight.size * jnp.dtype(weight.dtype).itemsize
                      + bias.size * jnp.dtype(bias.dtype).itemsize
                      + n * e * out_dtype.itemsize)
    cost = pl.CostEstimate(flops=2 * n * k * e, transcendentals=0,
                           bytes_accessed=bytes_accessed)

    # PARALLEL is portable on all generations; CORE_PARALLEL asks Mosaic to shard the
    # independent row tiles across v7x's 2 TensorCores (use with >= 2 row tiles).
    dim_sem = pltpu.CORE_PARALLEL if core_parallel else pltpu.PARALLEL

    out = pl.pallas_call(
        _linear_kernel,
        out_shape=jax.ShapeDtypeStruct((n, e), out_dtype),
        grid=grid,
        in_specs=[
            # x: one row tile per grid step (auto double-buffered by Pallas).
            pl.BlockSpec((tn, k), lambda i: (i, 0)),
            # weight / bias: constant index_map -> fetched once, stay resident.
            pl.BlockSpec((k, e), lambda i: (0, 0)),
            pl.BlockSpec((1, e), lambda i: (0, 0)),
        ],
        # Lane-dense output block: full 128-wide last dim -> unmasked stores.
        out_specs=pl.BlockSpec((tn, e), lambda i: (i, 0)),
        compiler_params=pltpu.CompilerParams(
            dimension_semantics=(dim_sem,),
            vmem_limit_bytes=vmem_limit,
        ),
        cost_estimate=cost,
    )(x2d, weight, b2d)

    return out.reshape(orig_shape[:-1] + (e,))


def init_params(key, input_size=INPUT_SIZE, embedding_size=EMBEDDING_SIZE):
    # Deterministic init matching nn.Linear's default U(-1/sqrt(in), 1/sqrt(in)).
    kw, kb = jax.random.split(key)
    bound = 1.0 / jnp.sqrt(jnp.float32(input_size))
    # Stored already transposed: [input_size, embedding_size]
    weight = jax.random.uniform(kw, (input_size, embedding_size),
                                jnp.float32, -bound, bound)
    bias = jax.random.uniform(kb, (embedding_size,), jnp.float32, -bound, bound)
    return weight, bias


if __name__ == "__main__":
    key = jax.random.PRNGKey(0)
    k_x, k_p, k_big = jax.random.split(key, 3)

    weight, bias = init_params(k_p)

    # Small shapes consistent with the module: batch=2, seq=8, input_size=6.
    batch, seq = 2, 8
    x = jax.random.normal(k_x, (batch, seq, INPUT_SIZE), jnp.float32)
    y_ref = x @ weight + bias

    # 1) Common regime (tiny N): XLA fast path.
    y = jax.block_until_ready(timestep_embedding(x, weight, bias))
    assert y.shape == (batch, seq, EMBEDDING_SIZE), y.shape
    assert jnp.allclose(y, y_ref, atol=1e-5, rtol=1e-5)

    # 2) Force the Pallas path on the same small input (single tiny tile).
    y_p = jax.block_until_ready(
        timestep_embedding(x, weight, bias, min_pallas_rows=0))
    assert jnp.allclose(y_p, y_ref, atol=1e-5, rtol=1e-5)

    # 3) Larger case: multiple row tiles + ragged tail through the Pallas path.
    x_big = jax.random.normal(k_big, (5, 2000, INPUT_SIZE), jnp.float32)
    y_big = jax.block_until_ready(timestep_embedding(x_big, weight, bias))
    y_big_ref = x_big @ weight + bias
    assert y_big.shape == (5, 2000, EMBEDDING_SIZE), y_big.shape
    assert jnp.allclose(y_big, y_big_ref, atol=1e-5, rtol=1e-5)

    # 4) bf16 output option (halves the dominant HBM writeback; f32 accumulate kept).
    y_bf16 = jax.block_until_ready(
        timestep_embedding(x_big, weight, bias, out_dtype=jnp.bfloat16))
    assert y_bf16.dtype == jnp.bfloat16
    assert jnp.allclose(y_bf16.astype(jnp.float32), y_big_ref, atol=5e-2, rtol=5e-2)

    print("KERNEL_OK")
</pallas_src>

<mosaic_0001>
module attributes {stable_mosaic.version = 11 : i64} {
  func.func @_linear_kernel(%arg0: i32, %arg1: memref<16x6xf32, #tpu.memory_space<vmem>>, %arg2: memref<6x128xf32, #tpu.memory_space<vmem>>, %arg3: memref<1x128xf32, #tpu.memory_space<vmem>>, %arg4: memref<16x128xf32, #tpu.memory_space<vmem>>) attributes {dimension_semantics = [#tpu.dimension_semantics<parallel>], iteration_bounds = array<i64: 1>, scalar_prefetch = 0 : i64, scratch_operands = 0 : i64, tpu.core_type = #tpu.core_type<tc>, window_params = [{transform_indices = @transform_0, window_bounds = array<i64: 16, 6>}, {pipeline_mode = #tpu.pipeline_mode<synchronous>, transform_indices = @transform_1, window_bounds = array<i64: 6, 128>}, {pipeline_mode = #tpu.pipeline_mode<synchronous>, transform_indices = @transform_2, window_bounds = array<i64: 1, 128>}, {transform_indices = @transform_3, window_bounds = array<i64: 16, 128>}]} {
    %c0 = arith.constant 0 : index
    %c0_0 = arith.constant 0 : index
    %0 = vector.load %arg1[%c0, %c0_0] : memref<16x6xf32, #tpu.memory_space<vmem>>, vector<16x6xf32>
    %c0_1 = arith.constant 0 : index
    %c0_2 = arith.constant 0 : index
    %1 = vector.load %arg2[%c0_1, %c0_2] : memref<6x128xf32, #tpu.memory_space<vmem>>, vector<6x128xf32>
    %cst = arith.constant dense<0.000000e+00> : vector<16x128xf32>
    %2 = tpu.matmul %0, %1, %cst {dimension_numbers = #tpu.dot_dimension_numbers<[1], [0], [0], [1], [0, 0, 1, 1], [], []>} : vector<16x6xf32>, vector<6x128xf32>, vector<16x128xf32> -> vector<16x128xf32>
    %c0_3 = arith.constant 0 : index
    %c0_4 = arith.constant 0 : index
    %3 = vector.load %arg3[%c0_3, %c0_4] : memref<1x128xf32, #tpu.memory_space<vmem>>, vector<1x128xf32>
    %4 = vector.broadcast %3 : vector<1x128xf32> to vector<16x128xf32>
    %5 = arith.addf %2, %4 : vector<16x128xf32>
    %c0_5 = arith.constant 0 : index
    %c0_6 = arith.constant 0 : index
    %6 = vector.load %arg4[%c0_5, %c0_6] : memref<16x128xf32, #tpu.memory_space<vmem>>, vector<16x128xf32>
    tpu.vector_store %arg4[%c0_5, %c0_6], %5 {strides = array<i32>} : memref<16x128xf32, #tpu.memory_space<vmem>>, vector<16x128xf32>,
    return
  }
  func.func @transform_0(%arg0: i32) -> (i32, i32) {
    %c0_i32 = arith.constant 0 : i32
    %c0_i32_0 = arith.constant 0 : i32
    return %arg0, %c0_i32 : i32, i32
  }
  func.func @transform_1(%arg0: i32) -> (i32, i32) {
    %c0_i32 = arith.constant 0 : i32
    %c0_i32_0 = arith.constant 0 : i32
    %c0_i32_1 = arith.constant 0 : i32
    return %c0_i32, %c0_i32_0 : i32, i32
  }
  func.func @transform_2(%arg0: i32) -> (i32, i32) {
    %c0_i32 = arith.constant 0 : i32
    %c0_i32_0 = arith.constant 0 : i32
    %c0_i32_1 = arith.constant 0 : i32
    return %c0_i32, %c0_i32_0 : i32, i32
  }
  func.func @transform_3(%arg0: i32) -> (i32, i32) {
    %c0_i32 = arith.constant 0 : i32
    %c0_i32_0 = arith.constant 0 : i32
    return %arg0, %c0_i32 : i32, i32
  }
}

</mosaic_0001>

<bundles_post_ra>
// kernel: tpu_custom_call.1
= control target key start
LH: loop header
LB: loop body
LE: loop exit
PB: predicated region body
PF: predicated region fallthrough
CT: control target
= control target key end

     0   :  { %vm32_vm0 = vcmask 1045504   ;;  %vm25_vm1 = vcmask 48128   ;;  %s215_s0 = inlined_call_operand.vmem [shape: f32[16,6], index: 0, kind: input, shape index: {}]   ;;  %s216_s1 = inlined_call_operand.vmem [shape: f32[6,128], index: 1, kind: input, shape index: {}]   ;;  %s217_s2 = inlined_call_operand.vmem [shape: f32[1,128], index: 2, kind: input, shape index: {}]   ;;  %s218_s3 = inlined_call_operand.hbm [shape: f32[16,128], index: 3, kind: output, shape index: {}]  }
   0x1   :  { %v17_v0 = vld [vmem:[%s216_s1] sm:$0x3f]  ;;  %v16_v2 = vld [vmem:[%s215_s0 + $0x8] sm:$0xff] }
   0x2   :  { %v15_v1 = vld [vmem:[%s215_s0] sm:$0xff]  ;;  %136 = vmatprep.subr.msk.mxu0 %vm32_vm0, %v17_v0 }
   0x3   :  { %138 = vmatprep.mubr.msk.f32.mxu0 %vm25_vm1, %v15_v1 }
   0x4   :  { %8 = vsyncpa [#allocation3], 0  ;;  %137 = vmatpush3.msk.msra.mxu0 %vm32_vm0, %v17_v0  ;;  %v129_v3 = vld [vmem:[%s217_s2] ss:$0 sm:$0xff]  ;;  %s168_s1 = smov [#allocation2]  }
   0x5   :  { %139 = vmatmul.mubr.msk.f32.vlgmr.msra.gmra.mrb[0].mxu0 %vm25_vm1, %v16_v2  ;;  %s118_s20 = sshll.u32 %s168_s1, 4  ;;  %s119_s20 = int_to_ptr.vmem [resolvable:$true] %s118_s20 }
   0x6   :  { %s144_s21 = scalar_lea.vmem %s119_s20, 256  ;;  %p149_p1 = scmp.lt.s32.totalorder %s119_s20, %s119_s20 }
   0x7   :  { %p145_p0 = scmp.ne.s32.totalorder %s119_s20, %s144_s21  ;;  %p150_p2 = scmp.lt.s32.totalorder %s144_s21, %s144_s21 }
   0x9   :  { %p151_p3 = por %p150_p2, %p149_p1 }
   0xb   :  { %p152_p4 = pnand %p151_p3, %p145_p0 }
  0xd8   :  { %v140_v4 = vpop.f32.mrb[0].mxu0 }
  0xd9   :  { %v108_v5 = vadd.f32 %v140_v4, %v129_v3  ;;  %v102_v6 = vpop.f32.mrb[1].mxu0 }
  0xda   :  { %v103_v7 = vadd.f32 %v129_v3, %v102_v6 }
  0xdb   :  { %112 = vst [vmem:[#allocation2 + $0x8] sm:$0xff] %v108_v5 }
  0xdc   :  { %111 = vst [vmem:[#allocation2] sm:$0xff] %v103_v7 }
  0xdd   :  { %155 = shalt.err (!%p152_p4)
}
  0xde   :  { %s156_s2 = scalar_lea.hbm %s218_s3, 256 }
  0xdf   :  { %p157_p5 = scmp.ne.s32.totalorder %s218_s3, %s156_s2  ;;  %p160_p6 = scmp.lt.u32.totalorder %s156_s2, %s218_s3 }
  0xe1   :  { %p162_p7 = pnand %p160_p6, %p157_p5 }
  0xe3   :  { %165 = shalt.err (!%p162_p7)
}
  0xe4   :  { %s169_s27 = smov 128   ;;  %s170_s28 = smov 8  }
  0xe5   :  { %124 = dma.vmem_to_hbm [thread:$0]  %s119_s20, 256, %s218_s3, [#allocation3], %s169_s27, %s169_s27, %s170_s28  }
  0xe6   :  { %166 = dma.done.wait [#allocation3], 256  }
  0xe7   :  { %167 = vsyncadd [#allocation3], 4294967040 }
  0xe8   :  { %128 = vsyncpa [#allocation3], 1 }

</bundles_post_ra>
